<compile_context>
chip_gen: v5e
topology: v5e:2x2
jax: 0.10.0
libtpu: 0.0.40
codegen_flags: <defaults>
</compile_context>

<pallas_src>
import functools

import jax
import jax.numpy as jnp
import numpy as np
from jax import lax
from jax.experimental import pallas as pl
from jax.experimental.pallas import tpu as pltpu

N_EMBD = 128       # n_embd from the reference module
NUM_HEADS = 4
HEAD_SIZE = 32     # head_size * num_heads == n_embd (as implied by proj shapes)
SEQ = 8            # small T (<= block_size=256)
BATCH = 2


def mha_kernel(x_ref, wqkv_ref, wp_ref, b_ref, o_ref,
               *, batch, seq, num_heads, head_size):
    """Whole batch in one invocation. Fused QKV + fused output projection."""
    H, hs = num_heads, head_size
    scale = hs ** (-0.5)
    BT = batch * seq

    x = x_ref[...]                                                   # (B*T, E) f32

    # Fused QKV projection: single lane-dense (B*T, E) @ (E, 3*H*hs) matmul.
    qkv = jnp.dot(x, wqkv_ref[...], preferred_element_type=jnp.float32)  # (B*T, 3*H*hs)
    qkv = qkv.reshape(batch, seq, 3 * H * hs)                        # (B, T, 3*H*hs)

    head_outs = []
    for h in range(H):                                               # static unroll, H small
        q = qkv[:, :, h * hs:(h + 1) * hs]                           # (B, T, hs)
        k = qkv[:, :, (H + h) * hs:(H + h + 1) * hs]                 # (B, T, hs)
        v = qkv[:, :, (2 * H + h) * hs:(2 * H + h + 1) * hs]         # (B, T, hs)

        # scores: batched contraction on head_size — no explicit k transpose
        wei = lax.dot_general(q, k, (((2,), (2,)), ((0,), (0,))),
                              preferred_element_type=jnp.float32) * scale  # (B, T, T)
        wei = wei - jnp.max(wei, axis=-1, keepdims=True)
        wei = jnp.exp(wei)
        # Exact reciprocal for the softmax denominator (approx vrcp broke the
        # 1e-4 accuracy budget).
        wei = wei * pl.reciprocal(jnp.sum(wei, axis=-1, keepdims=True))

        out_h = lax.dot_general(wei, v, (((2,), (1,)), ((0,), (0,))),
                                preferred_element_type=jnp.float32)   # (B, T, hs)
        head_outs.append(out_h)

    # "concat" along the lane axis -> (B*T, H*hs), then ONE fused output projection.
    cat = jnp.concatenate(head_outs, axis=-1).reshape(BT, H * hs)     # (B*T, H*hs)
    o_ref[...] = (jnp.dot(cat, wp_ref[...], preferred_element_type=jnp.float32)
                  + b_ref[...]).astype(o_ref.dtype)


def multi_head_attention(x, wq, wk, wv, wp, bp,
                         *, num_heads=NUM_HEADS, head_size=HEAD_SIZE):
    """x: (B, T, E); wq/wk/wv: (H, E, hs); wp: (H, hs, E); bp: (1, E)."""
    B, T, E = x.shape
    H, hs = num_heads, head_size

    # Fuse per-head projection weights into one (E, 3*H*hs) slab (head-major):
    #   cols [0 : H*hs)        -> Q,   [H*hs : 2*H*hs) -> K,   [2*H*hs : ) -> V
    def fuse(w):                                   # (H, E, hs) -> (E, H*hs)
        return jnp.transpose(w, (1, 0, 2)).reshape(E, H * hs)

    w_qkv = jnp.concatenate([fuse(wq), fuse(wk), fuse(wv)], axis=-1)  # (E, 3*H*hs)
    w_proj = wp.reshape(H * hs, E)                                    # (H*hs, E)

    x_flat = x.reshape(B * T, E)                                      # flatten batch+seq

    kernel = functools.partial(mha_kernel, batch=B, seq=T,
                               num_heads=H, head_size=hs)
    out_flat = pl.pallas_call(
        kernel,
        out_shape=jax.ShapeDtypeStruct((B * T, E), x.dtype),
        # single invocation (no grid): whole arrays live in VMEM
        in_specs=[pl.BlockSpec(memory_space=pltpu.MemorySpace.VMEM)] * 4,
        out_specs=pl.BlockSpec(memory_space=pltpu.MemorySpace.VMEM),
    )(x_flat, w_qkv, w_proj, bp)
    return out_flat.reshape(B, T, E)


def reference(x, wq, wk, wv, wp, bp):
    """Pure-JAX reference mirroring the PyTorch forward (eval mode)."""
    H, E, hs = wq.shape
    outs = []
    for h in range(H):
        q = x @ wq[h]
        k = x @ wk[h]
        v = x @ wv[h]
        wei = (q @ jnp.swapaxes(k, -1, -2)) * (hs ** -0.5)
        wei = jax.nn.softmax(wei, axis=-1)
        outs.append(wei @ v)
    cat = jnp.concatenate(outs, axis=-1)                      # (B, T, H*hs)
    wp_full = wp.reshape(H * hs, E)                           # (H*hs, E)
    return cat @ wp_full + bp[0]


if __name__ == "__main__":
    key = jax.random.PRNGKey(0)
    kx, kq, kk, kv, kp, kb = jax.random.split(key, 6)

    # deterministic "weights" (PyTorch Linear stores (out,in); we pre-transpose
    # to (in,out) so that y = x @ W matches y = x @ W_pt.T)
    x = jax.random.normal(kx, (BATCH, SEQ, N_EMBD), jnp.float32)
    wq = jax.random.normal(kq, (NUM_HEADS, N_EMBD, HEAD_SIZE), jnp.float32) * 0.05
    wk = jax.random.normal(kk, (NUM_HEADS, N_EMBD, HEAD_SIZE), jnp.float32) * 0.05
    wv = jax.random.normal(kv, (NUM_HEADS, N_EMBD, HEAD_SIZE), jnp.float32) * 0.05
    wp = jax.random.normal(kp, (NUM_HEADS, HEAD_SIZE, N_EMBD), jnp.float32) * 0.05
    bp = jax.random.normal(kb, (1, N_EMBD), jnp.float32) * 0.05

    # TODO(synk): dropout (p=0.2) is identity in eval mode; not implemented in-kernel.
    out = multi_head_attention(x, wq, wk, wv, wp, bp)
    out = jax.block_until_ready(out)

    ref = reference(x, wq, wk, wv, wp, bp)
    np.testing.assert_allclose(np.asarray(out), np.asarray(ref), rtol=1e-4, atol=1e-4)

    print("KERNEL_OK")
</pallas_src>

<mosaic_0001>
module attributes {stable_mosaic.version = 11 : i64} {
  func.func @mha_kernel(%arg0: memref<16x128xf32, #tpu.memory_space<vmem>>, %arg1: memref<128x384xf32, #tpu.memory_space<vmem>>, %arg2: memref<128x128xf32, #tpu.memory_space<vmem>>, %arg3: memref<1x128xf32, #tpu.memory_space<vmem>>, %arg4: memref<16x128xf32, #tpu.memory_space<vmem>>) attributes {dimension_semantics = [], scalar_prefetch = 0 : i64, scratch_operands = 0 : i64, tpu.core_type = #tpu.core_type<tc>} {
    %c0 = arith.constant 0 : index
    %c0_0 = arith.constant 0 : index
    %0 = vector.load %arg0[%c0, %c0_0] : memref<16x128xf32, #tpu.memory_space<vmem>>, vector<16x128xf32>
    %c0_1 = arith.constant 0 : index
    %c0_2 = arith.constant 0 : index
    %1 = vector.load %arg1[%c0_1, %c0_2] : memref<128x384xf32, #tpu.memory_space<vmem>>, vector<128x384xf32>
    %cst = arith.constant dense<0.000000e+00> : vector<16x384xf32>
    %2 = tpu.matmul %0, %1, %cst {dimension_numbers = #tpu.dot_dimension_numbers<[1], [0], [0], [1], [0, 0, 1, 1], [], []>} : vector<16x128xf32>, vector<128x384xf32>, vector<16x384xf32> -> vector<16x384xf32>
    %3 = vector.shape_cast %2 : vector<16x384xf32> to vector<2x8x384xf32>
    %4 = vector.extract_strided_slice %3 {offsets = [0, 0, 0], sizes = [2, 8, 32], strides = [1, 1, 1]} : vector<2x8x384xf32> to vector<2x8x32xf32>
    %5 = vector.extract_strided_slice %3 {offsets = [0, 0, 128], sizes = [2, 8, 32], strides = [1, 1, 1]} : vector<2x8x384xf32> to vector<2x8x32xf32>
    %6 = vector.extract_strided_slice %3 {offsets = [0, 0, 256], sizes = [2, 8, 32], strides = [1, 1, 1]} : vector<2x8x384xf32> to vector<2x8x32xf32>
    %cst_3 = arith.constant dense<0.000000e+00> : vector<2x8x8xf32>
    %7 = tpu.matmul %4, %5, %cst_3 {dimension_numbers = #tpu.dot_dimension_numbers<[2], [2], [1], [1], [0, 0, 0, 1, 1, 1], [0], [0]>} : vector<2x8x32xf32>, vector<2x8x32xf32>, vector<2x8x8xf32> -> vector<2x8x8xf32>
    %cst_4 = arith.constant 0.176776692 : f32
    %8 = vector.broadcast %cst_4 : f32 to vector<2x8x8xf32>
    %9 = arith.mulf %7, %8 : vector<2x8x8xf32>
    %cst_5 = arith.constant dense<0xFF800000> : vector<2x8xf32>
    %10 = vector.multi_reduction <maximumf>, %9, %cst_5 [2] : vector<2x8x8xf32> to vector<2x8xf32>
    %11 = vector.shape_cast %10 : vector<2x8xf32> to vector<2x8x1xf32>
    %12 = vector.broadcast %11 : vector<2x8x1xf32> to vector<2x8x8xf32>
    %13 = arith.subf %9, %12 : vector<2x8x8xf32>
    %14 = math.exp %13 : vector<2x8x8xf32>
    %cst_6 = arith.constant dense<0.000000e+00> : vector<2x8xf32>
    %15 = vector.multi_reduction <add>, %14, %cst_6 [2] : vector<2x8x8xf32> to vector<2x8xf32>
    %16 = vector.shape_cast %15 : vector<2x8xf32> to vector<2x8x1xf32>
    %17 = tpu.reciprocal %16 : vector<2x8x1xf32> -> vector<2x8x1xf32>
    %18 = vector.broadcast %17 : vector<2x8x1xf32> to vector<2x8x8xf32>
    %19 = arith.mulf %14, %18 : vector<2x8x8xf32>
    %cst_7 = arith.constant dense<0.000000e+00> : vector<2x8x32xf32>
    %20 = tpu.matmul %19, %6, %cst_7 {dimension_numbers = #tpu.dot_dimension_numbers<[2], [1], [1], [2], [0, 0, 0, 1, 1, 2], [0], [0]>} : vector<2x8x8xf32>, vector<2x8x32xf32>, vector<2x8x32xf32> -> vector<2x8x32xf32>
    %21 = vector.extract_strided_slice %3 {offsets = [0, 0, 32], sizes = [2, 8, 32], strides = [1, 1, 1]} : vector<2x8x384xf32> to vector<2x8x32xf32>
    %22 = vector.extract_strided_slice %3 {offsets = [0, 0, 160], sizes = [2, 8, 32], strides = [1, 1, 1]} : vector<2x8x384xf32> to vector<2x8x32xf32>
    %23 = vector.extract_strided_slice %3 {offsets = [0, 0, 288], sizes = [2, 8, 32], strides = [1, 1, 1]} : vector<2x8x384xf32> to vector<2x8x32xf32>
    %cst_8 = arith.constant dense<0.000000e+00> : vector<2x8x8xf32>
    %24 = tpu.matmul %21, %22, %cst_8 {dimension_numbers = #tpu.dot_dimension_numbers<[2], [2], [1], [1], [0, 0, 0, 1, 1, 1], [0], [0]>} : vector<2x8x32xf32>, vector<2x8x32xf32>, vector<2x8x8xf32> -> vector<2x8x8xf32>
    %cst_9 = arith.constant 0.176776692 : f32
    %25 = vector.broadcast %cst_9 : f32 to vector<2x8x8xf32>
    %26 = arith.mulf %24, %25 : vector<2x8x8xf32>
    %cst_10 = arith.constant dense<0xFF800000> : vector<2x8xf32>
    %27 = vector.multi_reduction <maximumf>, %26, %cst_10 [2] : vector<2x8x8xf32> to vector<2x8xf32>
    %28 = vector.shape_cast %27 : vector<2x8xf32> to vector<2x8x1xf32>
    %29 = vector.broadcast %28 : vector<2x8x1xf32> to vector<2x8x8xf32>
    %30 = arith.subf %26, %29 : vector<2x8x8xf32>
    %31 = math.exp %30 : vector<2x8x8xf32>
    %cst_11 = arith.constant dense<0.000000e+00> : vector<2x8xf32>
    %32 = vector.multi_reduction <add>, %31, %cst_11 [2] : vector<2x8x8xf32> to vector<2x8xf32>
    %33 = vector.shape_cast %32 : vector<2x8xf32> to vector<2x8x1xf32>
    %34 = tpu.reciprocal %33 : vector<2x8x1xf32> -> vector<2x8x1xf32>
    %35 = vector.broadcast %34 : vector<2x8x1xf32> to vector<2x8x8xf32>
    %36 = arith.mulf %31, %35 : vector<2x8x8xf32>
    %cst_12 = arith.constant dense<0.000000e+00> : vector<2x8x32xf32>
    %37 = tpu.matmul %36, %23, %cst_12 {dimension_numbers = #tpu.dot_dimension_numbers<[2], [1], [1], [2], [0, 0, 0, 1, 1, 2], [0], [0]>} : vector<2x8x8xf32>, vector<2x8x32xf32>, vector<2x8x32xf32> -> vector<2x8x32xf32>
    %38 = vector.extract_strided_slice %3 {offsets = [0, 0, 64], sizes = [2, 8, 32], strides = [1, 1, 1]} : vector<2x8x384xf32> to vector<2x8x32xf32>
    %39 = vector.extract_strided_slice %3 {offsets = [0, 0, 192], sizes = [2, 8, 32], strides = [1, 1, 1]} : vector<2x8x384xf32> to vector<2x8x32xf32>
    %40 = vector.extract_strided_slice %3 {offsets = [0, 0, 320], sizes = [2, 8, 32], strides = [1, 1, 1]} : vector<2x8x384xf32> to vector<2x8x32xf32>
    %cst_13 = arith.constant dense<0.000000e+00> : vector<2x8x8xf32>
    %41 = tpu.matmul %38, %39, %cst_13 {dimension_numbers = #tpu.dot_dimension_numbers<[2], [2], [1], [1], [0, 0, 0, 1, 1, 1], [0], [0]>} : vector<2x8x32xf32>, vector<2x8x32xf32>, vector<2x8x8xf32> -> vector<2x8x8xf32>
    %cst_14 = arith.constant 0.176776692 : f32
    %42 = vector.broadcast %cst_14 : f32 to vector<2x8x8xf32>
    %43 = arith.mulf %41, %42 : vector<2x8x8xf32>
    %cst_15 = arith.constant dense<0xFF800000> : vector<2x8xf32>
    %44 = vector.multi_reduction <maximumf>, %43, %cst_15 [2] : vector<2x8x8xf32> to vector<2x8xf32>
    %45 = vector.shape_cast %44 : vector<2x8xf32> to vector<2x8x1xf32>
    %46 = vector.broadcast %45 : vector<2x8x1xf32> to vector<2x8x8xf32>
    %47 = arith.subf %43, %46 : vector<2x8x8xf32>
    %48 = math.exp %47 : vector<2x8x8xf32>
    %cst_16 = arith.constant dense<0.000000e+00> : vector<2x8xf32>
    %49 = vector.multi_reduction <add>, %48, %cst_16 [2] : vector<2x8x8xf32> to vector<2x8xf32>
    %50 = vector.shape_cast %49 : vector<2x8xf32> to vector<2x8x1xf32>
    %51 = tpu.reciprocal %50 : vector<2x8x1xf32> -> vector<2x8x1xf32>
    %52 = vector.broadcast %51 : vector<2x8x1xf32> to vector<2x8x8xf32>
    %53 = arith.mulf %48, %52 : vector<2x8x8xf32>
    %cst_17 = arith.constant dense<0.000000e+00> : vector<2x8x32xf32>
    %54 = tpu.matmul %53, %40, %cst_17 {dimension_numbers = #tpu.dot_dimension_numbers<[2], [1], [1], [2], [0, 0, 0, 1, 1, 2], [0], [0]>} : vector<2x8x8xf32>, vector<2x8x32xf32>, vector<2x8x32xf32> -> vector<2x8x32xf32>
    %55 = vector.extract_strided_slice %3 {offsets = [0, 0, 96], sizes = [2, 8, 32], strides = [1, 1, 1]} : vector<2x8x384xf32> to vector<2x8x32xf32>
    %56 = vector.extract_strided_slice %3 {offsets = [0, 0, 224], sizes = [2, 8, 32], strides = [1, 1, 1]} : vector<2x8x384xf32> to vector<2x8x32xf32>
    %57 = vector.extract_strided_slice %3 {offsets = [0, 0, 352], sizes = [2, 8, 32], strides = [1, 1, 1]} : vector<2x8x384xf32> to vector<2x8x32xf32>
    %cst_18 = arith.constant dense<0.000000e+00> : vector<2x8x8xf32>
    %58 = tpu.matmul %55, %56, %cst_18 {dimension_numbers = #tpu.dot_dimension_numbers<[2], [2], [1], [1], [0, 0, 0, 1, 1, 1], [0], [0]>} : vector<2x8x32xf32>, vector<2x8x32xf32>, vector<2x8x8xf32> -> vector<2x8x8xf32>
    %cst_19 = arith.constant 0.176776692 : f32
    %59 = vector.broadcast %cst_19 : f32 to vector<2x8x8xf32>
    %60 = arith.mulf %58, %59 : vector<2x8x8xf32>
    %cst_20 = arith.constant dense<0xFF800000> : vector<2x8xf32>
    %61 = vector.multi_reduction <maximumf>, %60, %cst_20 [2] : vector<2x8x8xf32> to vector<2x8xf32>
    %62 = vector.shape_cast %61 : vector<2x8xf32> to vector<2x8x1xf32>
    %63 = vector.broadcast %62 : vector<2x8x1xf32> to vector<2x8x8xf32>
    %64 = arith.subf %60, %63 : vector<2x8x8xf32>
    %65 = math.exp %64 : vector<2x8x8xf32>
    %cst_21 = arith.constant dense<0.000000e+00> : vector<2x8xf32>
    %66 = vector.multi_reduction <add>, %65, %cst_21 [2] : vector<2x8x8xf32> to vector<2x8xf32>
    %67 = vector.shape_cast %66 : vector<2x8xf32> to vector<2x8x1xf32>
    %68 = tpu.reciprocal %67 : vector<2x8x1xf32> -> vector<2x8x1xf32>
    %69 = vector.broadcast %68 : vector<2x8x1xf32> to vector<2x8x8xf32>
    %70 = arith.mulf %65, %69 : vector<2x8x8xf32>
    %cst_22 = arith.constant dense<0.000000e+00> : vector<2x8x32xf32>
    %71 = tpu.matmul %70, %57, %cst_22 {dimension_numbers = #tpu.dot_dimension_numbers<[2], [1], [1], [2], [0, 0, 0, 1, 1, 2], [0], [0]>} : vector<2x8x8xf32>, vector<2x8x32xf32>, vector<2x8x32xf32> -> vector<2x8x32xf32>
    %72 = tpu.concatenate %20, %37, %54, %71 in 2 : vector<2x8x32xf32>, vector<2x8x32xf32>, vector<2x8x32xf32>, vector<2x8x32xf32> -> vector<2x8x128xf32>
    %73 = vector.shape_cast %72 : vector<2x8x128xf32> to vector<16x128xf32>
    %c0_23 = arith.constant 0 : index
    %c0_24 = arith.constant 0 : index
    %74 = vector.load %arg2[%c0_23, %c0_24] : memref<128x128xf32, #tpu.memory_space<vmem>>, vector<128x128xf32>
    %cst_25 = arith.constant dense<0.000000e+00> : vector<16x128xf32>
    %75 = tpu.matmul %73, %74, %cst_25 {dimension_numbers = #tpu.dot_dimension_numbers<[1], [0], [0], [1], [0, 0, 1, 1], [], []>} : vector<16x128xf32>, vector<128x128xf32>, vector<16x128xf32> -> vector<16x128xf32>
    %c0_26 = arith.constant 0 : index
    %c0_27 = arith.constant 0 : index
    %76 = vector.load %arg3[%c0_26, %c0_27] : memref<1x128xf32, #tpu.memory_space<vmem>>, vector<1x128xf32>
    %77 = vector.broadcast %76 : vector<1x128xf32> to vector<16x128xf32>
    %78 = arith.addf %75, %77 : vector<16x128xf32>
    %c0_28 = arith.constant 0 : index
    %c0_29 = arith.constant 0 : index
    %79 = vector.load %arg4[%c0_28, %c0_29] : memref<16x128xf32, #tpu.memory_space<vmem>>, vector<16x128xf32>
    tpu.vector_store %arg4[%c0_28, %c0_29], %78 {strides = array<i32>} : memref<16x128xf32, #tpu.memory_space<vmem>>, vector<16x128xf32>,
    return
  }
}

</mosaic_0001>

<bundles_post_ra>
// kernel: tpu_custom_call.1
= control target key start
LH: loop header
LB: loop body
LE: loop exit
PB: predicated region body
PF: predicated region fallthrough
CT: control target
= control target key end

     0   :  { %9 = vsyncpa [#allocation3], 0  ;;  %s1265_s0 = inlined_call_operand.hbm [shape: f32[16,128], index: 0, kind: input, shape index: {}]   ;;  %s1266_s1 = inlined_call_operand.hbm [shape: f32[128,384], index: 1, kind: input, shape index: {}]   ;;  %s1267_s2 = inlined_call_operand.hbm [shape: f32[128,128], index: 2, kind: input, shape index: {}]   ;;  %s1268_s3 = inlined_call_operand.vmem [shape: f32[1,128], index: 3, kind: input, shape index: {}]   ;;  %s1269_s4 = inlined_call_operand.hbm [shape: f32[16,128], index: 4, kind: output, shape index: {}]  }
   0x1   :  { %10 = vsyncpa [#allocation6], 0  ;;  %s29_s17 = sshll.u32 %s1266_s1, 4  ;;  %s30_s17 = int_to_ptr.hbm [resolvable:$true] %s29_s17 }
   0x2   :  { %11 = vsyncpa [#allocation4], 0  ;;  %s1077_s18 = smov [#allocation5]   ;;  %s16_s22 = sshll.u32 %s1265_s0, 4  ;;  %s17_s22 = int_to_ptr.hbm [resolvable:$true] %s16_s22 }
   0x3   :  { %s31_s19 = sshll.u32 %s1077_s18, 4  ;;  %s1078_s23 = smov 384   ;;  %s32_s19 = int_to_ptr.vmem [resolvable:$true] %s31_s19 }
   0x4   :  { %s1079_s24 = smov 24   ;;  %s1080_s25 = smov [#allocation2]  }
   0x5   :  { %37 = dma.hbm_to_vmem [thread:$0]  %s30_s17, 6144, %s32_s19, [#allocation6], %s1078_s23, %s1078_s23, %s1079_s24  }
   0x6   :  { %s18_s26 = sshll.u32 %s1080_s25, 4  ;;  %s1081_s27 = smov 128   ;;  %s19_s26 = int_to_ptr.vmem [resolvable:$true] %s18_s26 }
   0x7   :  { %s1082_s28 = smov 8   ;;  %s42_s30 = sshll.u32 %s1267_s2, 4  ;;  %s43_s30 = int_to_ptr.hbm [resolvable:$true] %s42_s30 }
   0x8   :  { %24 = dma.hbm_to_vmem [thread:$0]  %s17_s22, 256, %s19_s26, [#allocation3], %s1081_s27, %s1081_s27, %s1082_s28  }
   0x9   :  { %s1083_s5 = smov [#allocation7]  }
   0xa   :  { %s44_s0 = sshll.u32 %s1083_s5, 4  ;;  %s45_s0 = int_to_ptr.vmem [resolvable:$true] %s44_s0 }
   0xb   :  { %50 = dma.hbm_to_vmem [thread:$0]  %s43_s30, 2048, %s45_s0, [#allocation6], %s1081_s27, %s1081_s27, %s1082_s28  }
   0xc   :  { %1071 = dma.done.wait [#allocation3], 256  }
   0xd   :  { %1072 = vsyncadd [#allocation3], 4294967040 }
   0xe   :  { %1073 = dma.done.wait [#allocation6], 8192  }
   0xf   :  { %1074 = vsyncadd [#allocation6], 4294959104  ;;  %v113_v0 = vld [vmem:[#allocation5 + $0x170] sm:$0xff]  ;;  %v110_v1 = vld [vmem:[#allocation5 + $0x158] sm:$0xff]  ;;  %vm184_vm0 = vcmask 261120   ;;  %s1084_s2 = smov 96  }
  0x10   :  { %v112_v2 = vld [vmem:[#allocation5 + $0x168] sm:$0xff]  ;;  %138 = vmatpush.msra.mxu1 %v113_v0  ;;  %v109_v3 = vld [vmem:[#allocation5 + $0x150] sm:$0xff]  ;;  %v107_v4 = vld [vmem:[#allocation5 + $0x140] sm:$0xff]  ;;  %s1085_s6 = smov 64   ;;  %vm239_vm1 = vcmask 64512   ;;  %s1086_s7 = smov 32  }
  0x11   :  { %115 = vmatpush.msra.mxu0 %v112_v2  ;;  %v106_v5 = vld [vmem:[#allocation5 + $0x138] sm:$0xff]  ;;  %v104_v6 = vld [vmem:[#allocation5 + $0x128] sm:$0xff]  ;;  %v103_v7 = vld [vmem:[#allocation5 + $0x120] sm:$0xff]  ;;  %s1087_s10 = smov [#allocation8]   ;;  %s893_s14 = sshll.u32 %s1269_s4, 4  ;;  %s894_s14 = int_to_ptr.hbm [resolvable:$true] %s893_s14 }
  0x12   :  { %139 = vmatpush.msra.mxu1 %v110_v1  ;;  %v101_v8 = vld [vmem:[#allocation5 + $0x110] sm:$0xff]  ;;  %v100_v9 = vld [vmem:[#allocation5 + $0x108] sm:$0xff]  ;;  %v98_v10 = vld [vmem:[#allocation5 + $0xf8] sm:$0xff]  ;;  %s891_s11 = sshll.u32 %s1087_s10, 4  ;;  %s892_s11 = int_to_ptr.vmem [resolvable:$true] %s891_s11 }
  0x13   :  { %116 = vmatpush.msra.mxu0 %v109_v3  ;;  %v97_v11 = vld [vmem:[#allocation5 + $0xf0] sm:$0xff]  ;;  %v95_v12 = vld [vmem:[#allocation5 + $0xe0] sm:$0xff]  ;;  %v94_v13 = vld [vmem:[#allocation5 + $0xd8] sm:$0xff] }
  0x14   :  { %140 = vmatpush.msra.mxu1 %v107_v4  ;;  %v92_v14 = vld [vmem:[#allocation5 + $0xc8] sm:$0xff]  ;;  %v91_v15 = vld [vmem:[#allocation5 + $0xc0] sm:$0xff]  ;;  %v89_v16 = vld [vmem:[#allocation5 + $0xb0] sm:$0xff] }
  0x15   :  { %117 = vmatpush.msra.mxu0 %v106_v5  ;;  %v88_v17 = vld [vmem:[#allocation5 + $0xa8] sm:$0xff]  ;;  %v86_v18 = vld [vmem:[#allocation5 + $0x98] sm:$0xff]  ;;  %v85_v19 = vld [vmem:[#allocation5 + $0x90] sm:$0xff] }
  0x16   :  { %141 = vmatpush.msra.mxu1 %v104_v6  ;;  %v83_v20 = vld [vmem:[#allocation5 + $0x80] sm:$0xff]  ;;  %v82_v21 = vld [vmem:[#allocation5 + $0x78] sm:$0xff]  ;;  %v80_v22 = vld [vmem:[#allocation5 + $0x68] sm:$0xff] }
  0x17   :  { %118 = vmatpush.msra.mxu0 %v103_v7  ;;  %v79_v23 = vld [vmem:[#allocation5 + $0x60] sm:$0xff]  ;;  %v77_v24 = vld [vmem:[#allocation5 + $0x50] sm:$0xff]  ;;  %v76_v25 = vld [vmem:[#allocation5 + $0x48] sm:$0xff] }
  0x18   :  { %142 = vmatpush.msra.mxu1 %v101_v8  ;;  %v74_v26 = vld [vmem:[#allocation5 + $0x38] sm:$0xff]  ;;  %v73_v27 = vld [vmem:[#allocation5 + $0x30] sm:$0xff]  ;;  %v71_v28 = vld [vmem:[#allocation5 + $0x20] sm:$0xff] }
  0x19   :  { %119 = vmatpush.msra.mxu0 %v100_v9  ;;  %v70_v29 = vld [vmem:[#allocation5 + $0x18] sm:$0xff]  ;;  %v68_v30 = vld [vmem:[#allocation5 + $0x8] sm:$0xff]  ;;  %v67_v31 = vld [vmem:[#allocation5] sm:$0xff] }
  0x1a   :  { %143 = vmatpush.msra.mxu1 %v98_v10  ;;  %v1128_v32 = vld [vmem:[#allocation2] sm:$0xff]  ;;  %v66_v33 = vld [vmem:[#allocation2 + $0x8] sm:$0xff]  ;;  %v111_v40 = vld [vmem:[#allocation5 + $0x160] sm:$0xff] }
  0x1b   :  { %120 = vmatpush.msra.mxu0 %v97_v11  ;;  %v114_v39 = vld [vmem:[#allocation5 + $0x178] sm:$0xff]  ;;  %v108_v42 = vld [vmem:[#allocation5 + $0x148] sm:$0xff]  ;;  %v105_v44 = vld [vmem:[#allocation5 + $0x130] sm:$0xff] }
  0x1c   :  { %144 = vmatpush.msra.mxu1 %v95_v12  ;;  %161 = vmatpush.msra.mxu2 %v114_v39  ;;  %v102_v45 = vld [vmem:[#allocation5 + $0x118] sm:$0xff]  ;;  %v99_v47 = vld [vmem:[#allocation5 + $0x100] sm:$0xff]  ;;  %v96_v49 = vld [vmem:[#allocation5 + $0xe8] sm:$0xff] }
  0x1d   :  { %121 = vmatpush.msra.mxu0 %v94_v13  ;;  %v93_v51 = vld [vmem:[#allocation5 + $0xd0] sm:$0xff]  ;;  %v90_v52 = vld [vmem:[#allocation5 + $0xb8] sm:$0xff]  ;;  %v87_v53 = vld [vmem:[#allocation5 + $0xa0] sm:$0xff] }
  0x1e   :  { %145 = vmatpush.msra.mxu1 %v92_v14  ;;  %162 = vmatpush.msra.mxu2 %v111_v40  ;;  %v84_v54 = vld [vmem:[#allocation5 + $0x88] sm:$0xff]  ;;  %v81_v55 = vld [vmem:[#allocation5 + $0x70] sm:$0xff]  ;;  %v78_v56 = vld [vmem:[#allocation5 + $0x58] sm:$0xff] }
  0x1f   :  { %122 = vmatpush.msra.mxu0 %v91_v15  ;;  %v75_v57 = vld [vmem:[#allocation5 + $0x40] sm:$0xff]  ;;  %v72_v58 = vld [vmem:[#allocation5 + $0x28] sm:$0xff]  ;;  %v69_v59 = vld [vmem:[#allocation5 + $0x10] sm:$0xff] }
  0x20   :  { %146 = vmatpush.msra.mxu1 %v89_v16  ;;  %163 = vmatpush.msra.mxu2 %v108_v42 }
  0x21   :  { %123 = vmatpush.msra.mxu0 %v88_v17 }
  0x22   :  { %147 = vmatpush.msra.mxu1 %v86_v18  ;;  %164 = vmatpush.msra.mxu2 %v105_v44 }
  0x23   :  { %124 = vmatpush.msra.mxu0 %v85_v19 }
  0x24   :  { %148 = vmatpush.msra.mxu1 %v83_v20  ;;  %165 = vmatpush.msra.mxu2 %v102_v45 }
  0x25   :  { %125 = vmatpush.msra.mxu0 %v82_v21 }
  0x26   :  { %149 = vmatpush.msra.mxu1 %v80_v22  ;;  %166 = vmatpush.msra.mxu2 %v99_v47 }
  0x27   :  { %126 = vmatpush.msra.mxu0 %v79_v23 }
  0x28   :  { %150 = vmatpush.msra.mxu1 %v77_v24  ;;  %167 = vmatpush.msra.mxu2 %v96_v49 }
  0x29   :  { %127 = vmatpush.msra.mxu0 %v76_v25 }
  0x2a   :  { %151 = vmatpush.msra.mxu1 %v74_v26  ;;  %168 = vmatpush.msra.mxu2 %v93_v51 }
  0x2b   :  { %128 = vmatpush.msra.mxu0 %v73_v27 }
  0x2c   :  { %152 = vmatpush.msra.mxu1 %v71_v28  ;;  %169 = vmatpush.msra.mxu2 %v90_v52 }
  0x2d   :  { %129 = vmatpush.msra.mxu0 %v70_v29 }
  0x2e   :  { %153 = vmatpush.msra.mxu1 %v68_v30  ;;  %170 = vmatpush.msra.mxu2 %v87_v53 }
  0x2f   :  { %130 = vmatpush.msra.mxu0 %v67_v31  ;;  %154 = vmatmul.f32.vlgmr.msra.gmra.mxu1 %v1128_v32 }
  0x30   :  { %131 = vmatmul.f32.vlgmr.msra.gmra.mxu0 %v1128_v32  ;;  %171 = vmatpush.msra.mxu2 %v84_v54 }
  0x32   :  { %172 = vmatpush.msra.mxu2 %v81_v55 }
  0x34   :  { %173 = vmatpush.msra.mxu2 %v78_v56 }
  0x36   :  { %174 = vmatpush.msra.mxu2 %v75_v57 }
  0x37   :  { %157 = vmatmul.f32.gmra.mxu1 %v66_v33 }
  0x38   :  { %134 = vmatmul.f32.gmra.mxu0 %v66_v33  ;;  %175 = vmatpush.msra.mxu2 %v72_v58 }
  0x3a   :  { %176 = vmatpush.msra.mxu2 %v69_v59 }
  0x3b   :  { %177 = vmatmul.f32.vlgmr.msra.gmra.mxu2 %v1128_v32 }
  0x43   :  { %180 = vmatmul.f32.gmra.mxu2 %v66_v33 }
  0xac   :  { %v1132_v34 = vpop.f32.mrf.mxu1 }
  0xad   :  { %v1134_v35 = vpop.f32.mrf.mxu0  ;;  %336 = vrot.lane.b32.xlu2 %v1132_v34, %s1084_s2  ;;  %907 = vmatpush.xpose.msk.msra.mxu3 %vm184_vm0, %v1132_v34 }
  0xb0   :  { %908 = vmatmul.msk.f32.vlgmr.msra.gmra.mxu3 %vm184_vm0, %v1134_v35 }
  0xb4   :  { %v1142_v36 = vpop.f32.mrf.mxu1 }
  0xb5   :  { %909 = vmatpush.xpose.msk.msrb.mxu3 %vm184_vm0, %v1142_v36  ;;  %334 = vrot.lane.b32.xlu2 %v1134_v35, %s1084_s2  ;;  %v1148_v37 = vpop.f32.mrf.mxu0 }
  0xb8   :  { %910 = vmatmul.msk.f32.vlgmr.msrb.gmra.mxu3 %vm184_vm0, %v1148_v37 }
  0xbd   :  { %496 = vrot.lane.b32.xlu2 %v1132_v34, %s1085_s6 }
  0xbe   :  { %v1165_v6 = vpop.f32.mrf.mxu2 }
  0xbf   :  { %306 = vmatpush.msra.mxu3 %v1165_v6 }
  0xc5   :  { %494 = vrot.lane.b32.xlu2 %v1134_v35, %s1085_s6 }
  0xc6   :  { %v1170_v7 = vpop.f32.mrf.mxu2 }
  0xc7   :  { %329 = vmatpush.msrb.mxu3 %v1170_v7 }
 0x107   :  { %v337_v19 = vpop.permute.xlu2 %336 }
 0x10f   :  { %v335_v32 = vpop.permute.xlu2 %334 }
 0x117   :  { %v497_v39 = vpop.permute.xlu2 %496 }
 0x133   :  { %v208_v38 = vpop.f32.mrf.mxu3 }
 0x134   :  { %v237_v41 = vmul.f32 0.17677669, %v208_v38 }
 0x136   :  { %v240_v43 = vsel %vm239_vm1, %v237_v41, -inf }
 0x137   :  { %241 = vmax.xlane.f32.xlu0 %v240_v43 }
 0x13b   :  { %v234_v46 = vpop.f32.mrf.mxu3 }
 0x13c   :  { %v238_v48 = vmul.f32 0.17677669, %v234_v46 }
 0x13e   :  { %v243_v50 = vsel %vm239_vm1, %v238_v48, -inf }
 0x13f   :  { %244 = vmax.xlane.f32.xlu0 %v243_v50 }
 0x153   :  { %364 = vrot.lane.b32.xlu0 %v1142_v36, %s1084_s2 }
 0x1aa   :  { %v242_v60 = vpop.xlane.xlu0 %241 }
 0x1ab   :  { %v246_v61 = vsub.f32 %v237_v41, %v242_v60  ;;  %v495_v41 = vpop.permute.xlu2 %494 }
 0x1ad   :  { %v248_v62 = vmul.f32 1.442695, %v246_v61 }
 0x1af   :  { %943 = vpow2.f32 %v248_v62 }
 0x1b2   :  { %v245_v63 = vpop.xlane.xlu0 %244 }
 0x1b3   :  { %v247_v0 = vsub.f32 %v238_v48, %v245_v63 }
 0x1b5   :  { %v944_v1 = vpop.eup %943  ;;  %v250_v2 = vmul.f32 1.442695, %v247_v0 }
 0x1b6   :  { %v252_v3 = vsel %vm239_vm1, %v944_v1, 0.0 }
 0x1b7   :  { %945 = vpow2.f32 %v250_v2  ;;  %253 = vadd.xlane.f32.xlu1 %v252_v3 }
 0x1bd   :  { %v946_v4 = vpop.eup %945 }
 0x1be   :  { %v255_v5 = vsel %vm239_vm1, %v946_v4, 0.0 }
 0x1bf   :  { %256 = vadd.xlane.f32.xlu1 %v255_v5 }
 0x1c5   :  { %v365_v38 = vpop.permute.xlu0 %364 }
 0x1d8   :  { %362 = vrot.lane.b32.xlu1 %v1148_v37, %s1084_s2 }
 0x1e0   :  { %600 = vrot.lane.b32.xlu1 %v1165_v6, %s1085_s6 }
 0x22a   :  { %v254_v8 = vpop.xlane.xlu1 %253 }
 0x22b   :  { %947 = vrcp.f32 %v254_v8  ;;  %v269_v13 = vand.u32 2147483648, %v254_v8  ;;  %v267_v15 = vand.u32 2147483647, %v254_v8  ;;  %vm263_vm3 = vweird.f32 %v254_v8 }
 0x22d   :  { %v270_v18 = vor.u32 1.1754944e-38, %v269_v13  ;;  %vm268_vm5 = vcmp.eq.f32.partialorder %v267_v15, 8.507059e+37 }
 0x231   :  { %v948_v9 = vpop.eup %947 }
 0x232   :  { %v259_v10 = vmul.f32 %v948_v9, %v254_v8  ;;  %v257_v11 = vpop.xlane.xlu1 %256  ;;  %vm264_vm2 = vweird.f32 %v948_v9 }
 0x233   :  { %949 = vrcp.f32 %v257_v11  ;;  %vm265_vm4 = vmor %vm263_vm3, %vm264_vm2  ;;  %v283_v25 = vand.u32 2147483648, %v257_v11  ;;  %v281_v27 = vand.u32 2147483647, %v257_v11  ;;  %vm277_vm7 = vweird.f32 %v257_v11 }
 0x234   :  { %v260_v12 = vsub.f32 1.0, %v259_v10 }
 0x235   :  { %v284_v29 = vor.u32 1.1754944e-38, %v283_v25  ;;  %vm282_vm9 = vcmp.eq.f32.partialorder %v281_v27, 8.507059e+37 }
 0x236   :  { %v261_v14 = vmul.f32 %v948_v9, %v260_v12 }
 0x238   :  { %v262_v16 = vadd.f32 %v948_v9, %v261_v14 }
 0x239   :  { %v950_v17 = vpop.eup %949 }
 0x23a   :  { %v266_v20 = vsel %vm265_vm4, %v948_v9, %v262_v16  ;;  %v273_v21 = vmul.f32 %v950_v17, %v257_v11  ;;  %vm278_vm6 = vweird.f32 %v950_v17 }
 0x23b   :  { %v271_v22 = vsel %vm268_vm5, %v270_v18, %v266_v20  ;;  %vm279_vm8 = vmor %vm277_vm7, %vm278_vm6 }
 0x23c   :  { %v274_v23 = vsub.f32 1.0, %v273_v21  ;;  %v286_v24 = vmul.f32 %v944_v1, %v271_v22 }
 0x23e   :  { %v275_v26 = vmul.f32 %v950_v17, %v274_v23  ;;  %911 = vmatmul.msk.f32.vlgmr.msra.gmra.mxu3 %vm239_vm1, %v286_v24 }
 0x23f   :  { %913 = vmatpush.xpose.msk.msra.mxu3 %vm184_vm0, %v337_v19 }
 0x240   :  { %v276_v28 = vadd.f32 %v950_v17, %v275_v26 }
 0x242   :  { %v280_v30 = vsel %vm279_vm8, %v950_v17, %v276_v28 }
 0x243   :  { %v285_v31 = vsel %vm282_vm9, %v284_v29, %v280_v30 }
 0x244   :  { %v287_v33 = vmul.f32 %v946_v4, %v285_v31 }
 0x246   :  { %912 = vmatmul.msk.f32.vlgmr.msrb.gmra.mxu3 %vm239_vm1, %v287_v33 }
 0x247   :  { %915 = vmatpush.xpose.msk.msrb.mxu3 %vm184_vm0, %v365_v38 }
 0x24a   :  { %v363_v40 = vpop.permute.xlu1 %362 }
 0x24e   :  { %914 = vmatmul.msk.f32.vlgmr.msra.gmra.mxu3 %vm184_vm0, %v335_v32 }
 0x24f   :  { %919 = vmatpush.xpose.msk.msra.mxu3 %vm184_vm0, %v497_v39 }
 0x252   :  { %v601_v63 = vpop.permute.xlu1 %600 }
 0x256   :  { %916 = vmatmul.msk.f32.vlgmr.msrb.gmra.mxu3 %vm184_vm0, %v363_v40 }
 0x25e   :  { %920 = vmatmul.msk.f32.vlgmr.msra.gmra.mxu3 %vm184_vm0, %v495_v41 }
 0x2c1   :  { %v1181_v42 = vpop.f32.mrf.mxu3 }
 0x2c9   :  { %v1183_v43 = vpop.f32.mrf.mxu3 }
 0x2d1   :  { %v359_v44 = vpop.f32.mrf.mxu3 }
 0x2d2   :  { %v390_v45 = vmul.f32 0.17677669, %v359_v44 }
 0x2d4   :  { %v392_v46 = vsel %vm239_vm1, %v390_v45, -inf }
 0x2d5   :  { %393 = vmax.xlane.f32.xlu2 %v392_v46 }
 0x2d9   :  { %v387_v47 = vpop.f32.mrf.mxu3 }
 0x2da   :  { %v1197_v51 = vmul.f32 0.17677669, %v387_v47 }
 0x2dc   :  { %v395_v52 = vsel %vm239_vm1, %v1197_v51, -inf }
 0x2e1   :  { %v519_v48 = vpop.f32.mrf.mxu3 }
 0x2e2   :  { %v550_v49 = vmul.f32 0.17677669, %v519_v48 }
 0x2e4   :  { %v552_v50 = vsel %vm239_vm1, %v550_v49, -inf }
 0x2e5   :  { %553 = vmax.xlane.f32.xlu0 %v552_v50 }
 0x2ed   :  { %524 = vrot.lane.b32.xlu2 %v1142_v36, %s1085_s6 }
 0x2f5   :  { %654 = vrot.lane.b32.xlu2 %v1132_v34, %s1086_s7 }
 0x2f9   :  { %441 = vrot.lane.b32.xlu0 %v1165_v6, %s1084_s2 }
 0x301   :  { %522 = vrot.lane.b32.xlu0 %v1148_v37, %s1085_s6 }
 0x309   :  { %682 = vrot.lane.b32.xlu0 %v1142_v36, %s1086_s7 }
 0x333   :  { %396 = vmax.xlane.f32.xlu0 %v395_v52 }
 0x348   :  { %v394_v53 = vpop.xlane.xlu2 %393 }
 0x349   :  { %v398_v54 = vsub.f32 %v390_v45, %v394_v53 }
 0x34b   :  { %v400_v55 = vmul.f32 1.442695, %v398_v54 }
 0x34d   :  { %951 = vpow2.f32 %v400_v55 }
 0x350   :  { %v525_v34 = vpop.permute.xlu2 %524 }
 0x351   :  { %921 = vmatpush.xpose.msk.msrb.mxu3 %vm184_vm0, %v525_v34 }
 0x353   :  { %v952_v56 = vpop.eup %951 }
 0x354   :  { %v404_v57 = vsel %vm239_vm1, %v952_v56, 0.0 }
 0x355   :  { %405 = vadd.xlane.f32.xlu1 %v404_v57 }
 0x358   :  { %v554_v58 = vpop.xlane.xlu0 %553  ;;  %v655_v4 = vpop.permute.xlu2 %654 }
 0x359   :  { %v558_v59 = vsub.f32 %v550_v49, %v554_v58 }
 0x35b   :  { %v560_v36 = vmul.f32 1.442695, %v558_v59 }
 0x35d   :  { %953 = vpow2.f32 %v560_v36 }
 0x363   :  { %v954_v60 = vpop.eup %953 }
 0x364   :  { %v564_v61 = vsel %vm239_vm1, %v954_v60, 0.0 }
 0x365   :  { %565 = vadd.xlane.f32.xlu2 %v564_v61 }
 0x36b   :  { %v442_v62 = vpop.permute.xlu0 %441 }
 0x36c   :  { %462 = vmatpush.msrb.mxu0 %v442_v62 }
 0x36e   :  { %621 = vmatpush.msra.mxu0 %v601_v63  ;;  %652 = vrot.lane.b32.xlu1 %v1134_v35, %s1086_s7 }
 0x373   :  { %v523_v0 = vpop.permute.xlu0 %522 }
 0x374   :  { %922 = vmatmul.msk.f32.vlgmr.msrb.gmra.mxu3 %vm184_vm0, %v523_v0 }
 0x37b   :  { %v683_v1 = vpop.permute.xlu0 %682 }
 0x37c   :  { %927 = vmatpush.xpose.msk.msra.mxu3 %vm184_vm0, %v683_v1 }
 0x37d   :  { %680 = vrot.lane.b32.xlu2 %v1148_v37, %s1086_s7 }
 0x3a6   :  { %v397_v28 = vpop.xlane.xlu0 %396 }
 0x3a7   :  { %v399_v29 = vsub.f32 %v1197_v51, %v397_v28 }
 0x3a9   :  { %v402_v31 = vmul.f32 1.442695, %v399_v29 }
 0x3c8   :  { %v406_v2 = vpop.xlane.xlu1 %405 }
 0x3c9   :  { %955 = vrcp.f32 %v406_v2  ;;  %v421_v10 = vand.u32 2147483648, %v406_v2  ;;  %v419_v11 = vand.u32 2147483647, %v406_v2  ;;  %vm415_vm11 = vweird.f32 %v406_v2 }
 0x3cb   :  { %v422_v12 = vor.u32 1.1754944e-38, %v421_v10  ;;  %vm420_vm13 = vcmp.eq.f32.partialorder %v419_v11, 8.507059e+37 }
 0x3cf   :  { %v956_v3 = vpop.eup %955 }
 0x3d0   :  { %v411_v5 = vmul.f32 %v956_v3, %v406_v2  ;;  %vm416_vm10 = vweird.f32 %v956_v3 }
 0x3d1   :  { %vm417_vm12 = vmor %vm415_vm11, %vm416_vm10 }
 0x3d2   :  { %v412_v8 = vsub.f32 1.0, %v411_v5 }
 0x3d4   :  { %v413_v9 = vmul.f32 %v956_v3, %v412_v8 }
 0x3d6   :  { %v414_v35 = vadd.f32 %v956_v3, %v413_v9 }
 0x3d8   :  { %v566_v13 = vpop.xlane.xlu2 %565  ;;  %v418_v14 = vsel %vm417_vm12, %v956_v3, %v414_v35 }
 0x3d9   :  { %957 = vrcp.f32 %v566_v13  ;;  %v423_v15 = vsel %vm420_vm13, %v422_v12, %v418_v14  ;;  %v581_v20 = vand.u32 2147483648, %v566_v13  ;;  %v579_v22 = vand.u32 2147483647, %v566_v13 }
 0x3da   :  { %v438_v37 = vmul.f32 %v952_v56, %v423_v15  ;;  %vm575_vm15 = vweird.f32 %v566_v13  ;;  %959 = vpow2.f32 %v402_v31 }
 0x3db   :  { %v582_v24 = vor.u32 1.1754944e-38, %v581_v20  ;;  %vm580_vm3 = vcmp.eq.f32.partialorder %v579_v22, 8.507059e+37 }
 0x3dc   :  { %917 = vmatmul.msk.f32.vlgmr.msrb.gmra.mxu0 %vm239_vm1, %v438_v37 }
 0x3dd   :  { %925 = vmatpush.xpose.msk.msrb.mxu0 %vm184_vm0, %v655_v4 }
 0x3df   :  { %v958_v16 = vpop.eup %957 }
 0x3e0   :  { %v571_v17 = vmul.f32 %v958_v16, %v566_v13  ;;  %v681_v18 = vpop.permute.xlu2 %680  ;;  %vm576_vm14 = vweird.f32 %v958_v16  ;;  %v653_v30 = vpop.permute.xlu1 %652 }
 0x3e1   :  { %928 = vmatmul.msk.f32.vlgmr.msra.gmra.mxu3 %vm184_vm0, %v681_v18  ;;  %vm577_vm2 = vmor %vm575_vm15, %vm576_vm14  ;;  %v960_v39 = vpop.eup %959 }
 0x3e2   :  { %v572_v19 = vsub.f32 1.0, %v571_v17  ;;  %v407_v40 = vsel %vm239_vm1, %v960_v39, 0.0 }
 0x3e4   :  { %v573_v21 = vmul.f32 %v958_v16, %v572_v19 }
 0x3e6   :  { %v574_v23 = vadd.f32 %v958_v16, %v573_v21 }
 0x3e8   :  { %v578_v25 = vsel %vm577_vm2, %v958_v16, %v574_v23 }
 0x3e9   :  { %v583_v26 = vsel %vm580_vm3, %v582_v24, %v578_v25 }
 0x3ea   :  { %v598_v27 = vmul.f32 %v954_v60, %v583_v26 }
 0x3ec   :  { %923 = vmatmul.msk.f32.vlgmr.msra.gmra.mxu0 %vm239_vm1, %v598_v27 }
 0x3f4   :  { %926 = vmatmul.msk.f32.vlgmr.msrb.gmra.mxu0 %vm184_vm0, %v653_v30 }
 0x3f7   :  { %v547_v32 = vpop.f32.mrf.mxu3 }
 0x3f8   :  { %v551_v33 = vmul.f32 0.17677669, %v547_v32 }
 0x3fa   :  { %v555_v38 = vsel %vm239_vm1, %v551_v33, -inf }
 0x3fb   :  { %556 = vmax.xlane.f32.xlu1 %v555_v38 }
 0x403   :  { %408 = vadd.xlane.f32.xlu1 %v407_v40 }
 0x459   :  { %v464_v41 = vpop.f32.mrf.mxu0 }
 0x464   :  { %v705_v44 = vpop.f32.mrf.mxu3 }
 0x465   :  { %v709_v45 = vmul.f32 0.17677669, %v705_v44 }
 0x467   :  { %v713_v46 = vsel %vm239_vm1, %v709_v45, -inf }
 0x468   :  { %714 = vmax.xlane.f32.xlu0 %v713_v46 }
 0x469   :  { %v1219_v47 = vpop.f32.mrf.mxu0 }
 0x46e   :  { %v557_v48 = vpop.xlane.xlu1 %556 }
 0x46f   :  { %v559_v49 = vsub.f32 %v551_v33, %v557_v48 }
 0x471   :  { %v562_v50 = vmul.f32 1.442695, %v559_v49  ;;  %v677_v51 = vpop.f32.mrf.mxu0 }
 0x472   :  { %v708_v52 = vmul.f32 0.17677669, %v677_v51 }
 0x473   :  { %961 = vpow2.f32 %v562_v50 }
 0x474   :  { %v710_v53 = vsel %vm239_vm1, %v708_v52, -inf }
 0x475   :  { %711 = vmax.xlane.f32.xlu2 %v710_v53 }
 0x476   :  { %v409_v34 = vpop.xlane.xlu1 %408 }
 0x477   :  { %963 = vrcp.f32 %v409_v34  ;;  %v435_v4 = vand.u32 2147483648, %v409_v34  ;;  %vm429_vm5 = vweird.f32 %v409_v34  ;;  %v433_v5 = vand.u32 2147483647, %v409_v34 }
 0x479   :  { %v962_v54 = vpop.eup %961  ;;  %v436_v11 = vor.u32 1.1754944e-38, %v435_v4  ;;  %vm434_vm7 = vcmp.eq.f32.partialorder %v433_v5, 8.507059e+37  ;;  %v845_v4 = vld [vmem:[#allocation7 + $0x18] sm:$0xff] }
 0x47a   :  { %v567_v55 = vsel %vm239_vm1, %v962_v54, 0.0 }
 0x47c   :  { %626 = vrot.lane.b32.xlu0 %v1170_v7, %s1085_s6 }
 0x47d   :  { %568 = vadd.xlane.f32.xlu2 %v567_v55  ;;  %v964_v59 = vpop.eup %963 }
 0x47e   :  { %v425_v36 = vmul.f32 %v964_v59, %v409_v34  ;;  %vm430_vm4 = vweird.f32 %v964_v59 }
 0x47f   :  { %vm431_vm6 = vmor %vm429_vm5, %vm430_vm4 }
 0x480   :  { %v426_v61 = vsub.f32 1.0, %v425_v36  ;;  %v854_v36 = vld [vmem:[#allocation7 + $0x60] sm:$0xff] }
 0x482   :  { %v427_v1 = vmul.f32 %v964_v59, %v426_v61  ;;  %v853_v61 = vld [vmem:[#allocation7 + $0x58] sm:$0xff] }
 0x484   :  { %v428_v3 = vadd.f32 %v964_v59, %v427_v1  ;;  %v848_v1 = vld [vmem:[#allocation7 + $0x30] sm:$0xff] }
 0x486   :  { %v432_v9 = vsel %vm431_vm6, %v964_v59, %v428_v3  ;;  %v855_v59 = vld [vmem:[#allocation7 + $0x68] sm:$0xff]  ;;  %v846_v3 = vld [vmem:[#allocation7 + $0x20] sm:$0xff]  ;;  %vm839_vm6 = vcmask 785408  }
 0x487   :  { %v437_v12 = vsel %vm434_vm7, %v436_v11, %v432_v9  ;;  %v843_v9 = vld [vmem:[#allocation7 + $0x8] sm:$0xff]  ;;  %v842_v11 = vld [vmem:[#allocation7] sm:$0xff] }
 0x488   :  { %v439_v37 = vmul.f32 %v960_v39, %v437_v12 }
 0x495   :  { %468 = vrot.lane.b32.xlu2 %v1170_v7, %s1084_s2 }
 0x49d   :  { %812 = vrot.lane.b32.xlu2 %v464_v41, %s1086_s7 }
 0x4db   :  { %v715_v56 = vpop.xlane.xlu0 %714 }
 0x4dc   :  { %v717_v57 = vsub.f32 %v709_v45, %v715_v56 }
 0x4de   :  { %v720_v58 = vmul.f32 1.442695, %v717_v57  ;;  %v857_v57 = vld [vmem:[#allocation7 + $0x78] sm:$0xff] }
 0x4df   :  { %862 = vmatpush.msrb.mxu2 %v857_v57 }
 0x4e0   :  { %965 = vpow2.f32 %v720_v58  ;;  %v856_v58 = vld [vmem:[#allocation7 + $0x70] sm:$0xff] }
 0x4e1   :  { %863 = vmatpush.msrb.mxu2 %v856_v58 }
 0x4e3   :  { %864 = vmatpush.msrb.mxu2 %v855_v59 }
 0x4e5   :  { %865 = vmatpush.msrb.mxu2 %v854_v36 }
 0x4e6   :  { %v1228_v60 = vpop.eup %965 }
 0x4e7   :  { %v725_v62 = vsel %vm239_vm1, %v1228_v60, 0.0  ;;  %866 = vmatpush.msrb.mxu2 %v853_v61 }
 0x4e8   :  { %v712_v63 = vpop.xlane.xlu2 %711  ;;  %726 = vadd.xlane.f32.xlu1 %v725_v62  ;;  %v852_v62 = vld [vmem:[#allocation7 + $0x50] sm:$0xff] }
 0x4e9   :  { %v716_v0 = vsub.f32 %v708_v52, %v712_v63  ;;  %867 = vmatpush.msrb.mxu2 %v852_v62  ;;  %v850_v63 = vld [vmem:[#allocation7 + $0x40] sm:$0xff] }
 0x4eb   :  { %v718_v2 = vmul.f32 1.442695, %v716_v0  ;;  %v849_v0 = vld [vmem:[#allocation7 + $0x38] sm:$0xff] }
 0x4ed   :  { %967 = vpow2.f32 %v718_v2  ;;  %v847_v2 = vld [vmem:[#allocation7 + $0x28] sm:$0xff] }
 0x4ee   :  { %v627_v16 = vpop.permute.xlu0 %626 }
 0x4f0   :  { %v569_v8 = vpop.xlane.xlu2 %568 }
 0x4f1   :  { %969 = vrcp.f32 %v569_v8  ;;  %v595_v18 = vand.u32 2147483648, %v569_v8  ;;  %v593_v20 = vand.u32 2147483647, %v569_v8  ;;  %vm589_vm9 = vweird.f32 %v569_v8 }
 0x4f3   :  { %v1232_v10 = vpop.eup %967  ;;  %v596_v22 = vor.u32 1.1754944e-38, %v595_v18  ;;  %vm594_vm11 = vcmp.eq.f32.partialorder %v593_v20, 8.507059e+37 }
 0x4f4   :  { %v722_v35 = vsel %vm239_vm1, %v1232_v10, 0.0 }
 0x4f5   :  { %723 = vadd.xlane.f32.xlu0 %v722_v35 }
 0x4f7   :  { %v970_v13 = vpop.eup %969 }
 0x4f8   :  { %v585_v14 = vmul.f32 %v970_v13, %v569_v8  ;;  %v469_v15 = vpop.permute.xlu2 %468  ;;  %vm590_vm8 = vweird.f32 %v970_v13  ;;  %v844_v8 = vld [vmem:[#allocation7 + $0x10] sm:$0xff] }
 0x4f9   :  { %489 = vmatpush.msrb.mxu1 %v469_v15  ;;  %vm591_vm10 = vmor %vm589_vm9, %vm590_vm8 }
 0x4fa   :  { %v586_v17 = vsub.f32 1.0, %v585_v14  ;;  %918 = vmatmul.msk.f32.vlgmr.msrb.gmra.mxu1 %vm239_vm1, %v439_v37 }
 0x4fb   :  { %647 = vmatpush.msra.mxu1 %v627_v16 }
 0x4fc   :  { %v587_v19 = vmul.f32 %v970_v13, %v586_v17 }
 0x4fe   :  { %v588_v21 = vadd.f32 %v970_v13, %v587_v19 }
 0x500   :  { %v592_v23 = vsel %vm591_vm10, %v970_v13, %v588_v21  ;;  %v813_v35 = vpop.permute.xlu2 %812 }
 0x501   :  { %v597_v24 = vsel %vm594_vm11, %v596_v22, %v592_v23  ;;  %758 = vrot.lane.b32.xlu1 %v1165_v6, %s1086_s7  ;;  %v834_v13 = vsel %vm184_vm0, %v1181_v42, %v813_v35  ;;  %v942_v22 = vld [vmem:[%s1268_s3] ss:$0 sm:$0xff] }
 0x502   :  { %v599_v25 = vmul.f32 %v962_v54, %v597_v24 }
 0x504   :  { %924 = vmatmul.msk.f32.vlgmr.msra.gmra.mxu1 %vm239_vm1, %v599_v25 }
 0x509   :  { %784 = vrot.lane.b32.xlu0 %v1170_v7, %s1086_s7  ;;  %820 = vrot.lane.b32.xlu1 %v1219_v47, %s1085_s6 }
 0x55b   :  { %v727_v26 = vpop.xlane.xlu1 %726 }
 0x55c   :  { %971 = vrcp.f32 %v727_v26  ;;  %v753_v38 = vand.u32 2147483648, %v727_v26  ;;  %vm747_vm13 = vweird.f32 %v727_v26  ;;  %v751_v40 = vand.u32 2147483647, %v727_v26 }
 0x55e   :  { %v754_v47 = vor.u32 1.1754944e-38, %v753_v38  ;;  %vm752_vm3 = vcmp.eq.f32.partialorder %v751_v40, 8.507059e+37 }
 0x562   :  { %v972_v27 = vpop.eup %971 }
 0x563   :  { %v743_v28 = vmul.f32 %v972_v27, %v727_v26  ;;  %vm748_vm12 = vweird.f32 %v972_v27 }
 0x564   :  { %vm749_vm14 = vmor %vm747_vm13, %vm748_vm12 }
 0x565   :  { %v744_v30 = vsub.f32 1.0, %v743_v28 }
 0x567   :  { %v745_v31 = vmul.f32 %v972_v27, %v744_v30 }
 0x568   :  { %v724_v29 = vpop.xlane.xlu0 %723 }
 0x569   :  { %973 = vrcp.f32 %v724_v29  ;;  %v746_v6 = vadd.f32 %v972_v27, %v745_v31  ;;  %v739_v7 = vand.u32 2147483648, %v724_v29  ;;  %v737_v45 = vand.u32 2147483647, %v724_v29 }
 0x56a   :  { %vm733_vm2 = vweird.f32 %v724_v29 }
 0x56b   :  { %v750_v46 = vsel %vm749_vm14, %v972_v27, %v746_v6  ;;  %v740_v49 = vor.u32 1.1754944e-38, %v739_v7  ;;  %vm738_vm5 = vcmp.eq.f32.partialorder %v737_v45, 8.507059e+37 }
 0x56c   :  { %v755_v51 = vsel %vm752_vm3, %v754_v47, %v750_v46 }
 0x56d   :  { %v757_v34 = vmul.f32 %v1228_v60, %v755_v51  ;;  %v851_v60 = vld [vmem:[#allocation7 + $0x48] sm:$0xff] }
 0x56e   :  { %868 = vmatpush.msrb.mxu2 %v851_v60 }
 0x56f   :  { %v974_v32 = vpop.eup %973 }
 0x570   :  { %v729_v33 = vmul.f32 %v974_v32, %v724_v29  ;;  %vm734_vm15 = vweird.f32 %v974_v32  ;;  %869 = vmatpush.msrb.mxu2 %v850_v63 }
 0x571   :  { %vm735_vm4 = vmor %vm733_vm2, %vm734_vm15 }
 0x572   :  { %v730_v39 = vsub.f32 1.0, %v729_v33  ;;  %870 = vmatpush.msrb.mxu2 %v849_v0 }
 0x573   :  { %v759_v41 = vpop.permute.xlu1 %758 }
 0x574   :  { %v731_v44 = vmul.f32 %v974_v32, %v730_v39  ;;  %779 = vmatpush.msra.mxu0 %v759_v41  ;;  %871 = vmatpush.msrb.mxu2 %v848_v1 }
 0x576   :  { %v732_v48 = vadd.f32 %v974_v32, %v731_v44  ;;  %872 = vmatpush.msrb.mxu2 %v847_v2 }
 0x577   :  { %v491_v50 = vpop.f32.mrf.mxu1 }
 0x578   :  { %v736_v52 = vsel %vm735_vm4, %v974_v32, %v732_v48  ;;  %814 = vrot.lane.b32.xlu2 %v491_v50, %s1086_s7  ;;  %873 = vmatpush.msrb.mxu2 %v846_v3 }
 0x579   :  { %v741_v53 = vsel %vm738_vm5, %v740_v49, %v736_v52 }
 0x57a   :  { %v756_v54 = vmul.f32 %v1232_v10, %v741_v53  ;;  %874 = vmatpush.msrb.mxu2 %v845_v4 }
 0x57b   :  { %v785_v55 = vpop.permute.xlu0 %784  ;;  %v821_v12 = vpop.permute.xlu1 %820 }
 0x57c   :  { %929 = vmatmul.msk.f32.vlgmr.msra.gmra.mxu0 %vm239_vm1, %v756_v54  ;;  %805 = vmatpush.msrb.mxu1 %v785_v55 }
 0x57d   :  { %930 = vmatmul.msk.f32.vlgmr.msrb.gmra.mxu1 %vm239_vm1, %v757_v34  ;;  %875 = vmatpush.msrb.mxu2 %v844_v8  ;;  %vm836_vm1 = vcmask 523264  }
 0x57e   :  { %v837_v14 = vsel %vm836_vm1, %v834_v13, %v821_v12 }
 0x57f   :  { %876 = vmatpush.msrb.mxu2 %v843_v9 }
 0x581   :  { %v649_v56 = vpop.f32.mrf.mxu1  ;;  %877 = vmatpush.msrb.mxu2 %v842_v11 }
 0x582   :  { %822 = vrot.lane.b32.xlu1 %v649_v56, %s1085_s6 }
 0x5d2   :  { %v815_v16 = vpop.permute.xlu2 %814 }
 0x5d3   :  { %v835_v18 = vsel %vm184_vm0, %v1183_v43, %v815_v16 }
 0x5f4   :  { %v823_v17 = vpop.permute.xlu1 %822 }
 0x5f5   :  { %v838_v19 = vsel %vm836_vm1, %v835_v18, %v823_v17 }
 0x5f9   :  { %v781_v5 = vpop.f32.mrf.mxu0 }
 0x5fa   :  { %828 = vrot.lane.b32.xlu0 %v781_v5, %s1084_s2  ;;  %v807_v10 = vpop.f32.mrf.mxu1 }
 0x602   :  { %830 = vrot.lane.b32.xlu0 %v807_v10, %s1084_s2 }
 0x66c   :  { %v829_v15 = vpop.permute.xlu0 %828 }
 0x66d   :  { %v840_v37 = vsel %vm839_vm6, %v837_v14, %v829_v15 }
 0x66e   :  { %878 = vmatmul.f32.vlgmr.msrb.gmra.mxu2 %v840_v37 }
 0x674   :  { %v831_v20 = vpop.permute.xlu0 %830 }
 0x675   :  { %v841_v21 = vsel %vm839_vm6, %v838_v19, %v831_v20 }
 0x676   :  { %881 = vmatmul.f32.gmra.mxu2 %v841_v21 }
 0x6f1   :  { %v879_v23 = vpop.f32.mrf.mxu2 }
 0x6f2   :  { %v880_v24 = vadd.f32 %v942_v22, %v879_v23 }
 0x6f4   :  { %885 = vst [vmem:[#allocation8] sm:$0xff] %v880_v24 }
 0x6f9   :  { %v882_v42 = vpop.f32.mrf.mxu2 }
 0x6fa   :  { %v883_v25 = vadd.f32 %v942_v22, %v882_v42 }
 0x6fc   :  { %886 = vst [vmem:[#allocation8 + $0x8] sm:$0xff] %v883_v25 }
 0x6fd   :  { %899 = dma.vmem_to_hbm [thread:$0]  %s892_s11, 256, %s894_s14, [#allocation4], %s1081_s27, %s1081_s27, %s1082_s28  }
 0x6fe   :  { %1075 = dma.done.wait [#allocation4], 256  }
 0x6ff   :  { %1076 = vsyncadd [#allocation4], 4294967040 }
 0x700   :  { %904 = vsyncpa [#allocation3], 1 }
 0x701   :  { %905 = vsyncpa [#allocation6], 1 }
 0x702   :  { %906 = vsyncpa [#allocation4], 1 }

</bundles_post_ra>
